<compile_context>
chip_gen: v5e
topology: v5e:2x2
jax: 0.10.0
libtpu: 0.0.40
codegen_flags: <defaults>
</compile_context>

<pallas_src>
import functools
import math

import jax
import jax.numpy as jnp
import numpy as np
from jax.experimental import pallas as pl
from jax.experimental.pallas import tpu as pltpu


def _round_up(x, m):
    return (x + m - 1) // m * m


# ----------------------------- Pallas kernel --------------------------------
def _edge_conv_kernel(featT_ref, wT_ref, bT_ref, mask_ref, adjT_ref,
                      invdeg_ref, resT_ref, outT_ref, *,
                      n_heads, head_size, apply_relu):
    e_idx = pl.program_id(1)
    C = n_heads * head_size

    @pl.when(e_idx == 0)
    def _init():
        outT_ref[...] = jnp.zeros_like(outT_ref)

    feat = featT_ref[...]                                            # [2Cin, tE]

    # Fused Q|K|V projection: one MXU matmul + one packed bias add.
    qkv = jnp.dot(wT_ref[...], feat,
                  preferred_element_type=jnp.float32) + bT_ref[...]  # [3C, tE]
    q = qkv[0:C, :]
    k = qkv[C:2 * C, :]
    v = qkv[2 * C:3 * C, :]

    scores = (q * k) * (1.0 / math.sqrt(head_size))                  # [C, tE]

    # Per-head max (stable per-head softmax) without sub-tile slicing:
    # mask is the block-diagonal head indicator, its columns select heads.
    mask = mask_ref[...]                                             # [C, C]
    neg_big = jnp.float32(-1e30)
    m = jnp.zeros_like(scores)
    for h in range(n_heads):
        col = mask[:, h * head_size:h * head_size + 1]               # [C, 1]
        m_h = jnp.max(jnp.where(col > 0.5, scores, neg_big),
                      axis=0, keepdims=True)                         # [1, tE]
        m = m + col * m_h
    e = jnp.exp(scores - m)
    denom = jnp.dot(mask, e, preferred_element_type=jnp.float32)     # per-head sums
    probs = e * pl.reciprocal(denom, approx=True)                    # EUP divide

    context = probs * v                                              # [C, tE]

    # Scatter of signed contributions (edge_weight folded into bf16 adjT);
    # accumulate into the resident output block.
    adj = adjT_ref[...].astype(jnp.float32)                          # [tE, tN]
    outT_ref[...] += jnp.dot(context, adj, preferred_element_type=jnp.float32)

    @pl.when(e_idx == pl.num_programs(1) - 1)
    def _finalize():
        acc = outT_ref[...] * invdeg_ref[...]                        # mean (1/deg)
        acc = acc + resT_ref[...]
        if apply_relu:
            acc = jnp.maximum(acc, 0.0)
        outT_ref[...] = acc


def edge_conv_layer_pallas(x, src, dst, edge_weight, params, n_heads,
                           residual=None, apply_relu=True):
    wq, bq, wk, bk, wv, bv = params
    N, Cin = x.shape
    Cin2 = 2 * Cin
    Cout = wq.shape[1]
    head_size = Cout // n_heads
    E = src.shape[0]

    # Tile sizes: edge axis on lanes (multiple of 128), node axis multiple of 8.
    tE = min(512, _round_up(max(E, 1), 128))
    E_pad = _round_up(max(E, 1), tE)
    tN = min(256, _round_up(N, 8))
    N_pad = _round_up(N, tN)

    # --- JAX glue: gather + concat, transposed so E sits on the lane axis ---
    x_i = x[dst]
    x_j = x[src]
    feat = jnp.concatenate([x_i, x_j - x_i], axis=1).astype(jnp.float32)   # [E, 2Cin]
    featT = jnp.pad(feat.T, ((0, 0), (0, E_pad - E)))                      # [2Cin, E_pad]
    # TODO(synk): featT/wT could be cast to bf16 for ~2x MXU/DMA on the
    # projection; kept f32 here to preserve tight numerics vs the reference.

    # Fused QKV weight/bias (Q | K | V packed along the output axis).
    wT = jnp.concatenate([wq, wk, wv], axis=1).T.astype(jnp.float32)       # [3Cout, 2Cin]
    bT = jnp.concatenate([bq, bk, bv], axis=0).reshape(3 * Cout, 1).astype(jnp.float32)

    # Signed one-hot scatter matrix (edge_weight in {-1,0,+1} folded in; exact
    # in bf16 -> half the bytes of f32).  Mean via 1/deg applied in-kernel.
    node_ids = jnp.arange(N_pad, dtype=jnp.int32)
    onehot = (dst[:, None].astype(jnp.int32) == node_ids[None, :]).astype(jnp.float32)
    adj_signed = onehot * edge_weight[:, None].astype(jnp.float32)         # [E, N_pad]
    adjT = jnp.pad(adj_signed, ((0, E_pad - E), (0, 0))).astype(jnp.bfloat16)
    deg = jnp.sum(onehot, axis=0)
    inv_deg = (1.0 / jnp.maximum(deg, 1.0)).reshape(1, N_pad).astype(jnp.float32)

    # Per-head block-diagonal mask (softmax denominators + head selectors).
    head_id = jnp.arange(Cout) // head_size
    mask = (head_id[:, None] == head_id[None, :]).astype(jnp.float32)

    if residual is None:
        resT = jnp.zeros((Cout, N_pad), jnp.float32)
    else:
        resT = jnp.pad(residual.T.astype(jnp.float32), ((0, 0), (0, N_pad - N)))

    grid = (N_pad // tN, E_pad // tE)

    # VMEM budget: double-buffered feat/adj tiles + resident accumulator +
    # weights + in-kernel intermediates, sized under the v7x 64 MiB/TC limit.
    vmem_need = (2 * Cin2 * tE * 4 + 2 * tE * tN * 2
                 + 3 * Cout * tN * 4 + 2 * tN * 4
                 + (3 * Cout * Cin2 + 3 * Cout + Cout * Cout) * 4
                 + 10 * Cout * tE * 4)
    vmem_limit = int(min(max(2 * vmem_need, 32 * 1024 * 1024), 48 * 1024 * 1024))

    cost = pl.CostEstimate(
        flops=int(grid[0] * (2 * E_pad * Cin2 * 3 * Cout + 2 * E_pad * Cout * Cout)
                  + 2 * E_pad * Cout * N_pad),
        transcendentals=int(grid[0] * E_pad * Cout),
        bytes_accessed=int(featT.size * 4 * grid[0] + adjT.size * 2
                           + (wT.size + bT.size + mask.size) * 4 * grid[0]
                           + (resT.size + inv_deg.size + Cout * N_pad) * 4),
    )

    kern = functools.partial(_edge_conv_kernel, n_heads=n_heads,
                             head_size=head_size, apply_relu=apply_relu)

    outT = pl.pallas_call(
        kern,
        out_shape=jax.ShapeDtypeStruct((Cout, N_pad), jnp.float32),
        grid=grid,
        in_specs=[
            pl.BlockSpec((Cin2, tE), lambda n, e: (0, e)),         # featT tile
            pl.BlockSpec((3 * Cout, Cin2), lambda n, e: (0, 0)),   # fused QKV weight
            pl.BlockSpec((3 * Cout, 1), lambda n, e: (0, 0)),      # fused QKV bias
            pl.BlockSpec((Cout, Cout), lambda n, e: (0, 0)),       # head mask
            # TODO(synk): if the adj DMA is still exposed, add
            # pipeline_mode=pl.Buffered(3) on this spec.
            pl.BlockSpec((tE, tN), lambda n, e: (e, n)),           # signed adj (bf16)
            pl.BlockSpec((1, tN), lambda n, e: (0, n)),            # 1/deg
            pl.BlockSpec((Cout, tN), lambda n, e: (0, n)),         # residual
        ],
        out_specs=pl.BlockSpec((Cout, tN), lambda n, e: (0, n)),   # resident accumulator
        compiler_params=pltpu.CompilerParams(
            dimension_semantics=("parallel", "arbitrary"),
            vmem_limit_bytes=vmem_limit),
        cost_estimate=cost,
    )(featT, wT, bT, mask, adjT, inv_deg, resT)

    return outT[:, :N].T                                           # [N, Cout]


# ------------------------- pure-JAX reference layer -------------------------
def edge_conv_layer_ref(x, src, dst, edge_weight, params, n_heads,
                        residual=None, apply_relu=True):
    wq, bq, wk, bk, wv, bv = params
    N = x.shape[0]
    Cout = wq.shape[1]
    hs = Cout // n_heads
    x_i = x[dst]
    x_j = x[src]
    feat = jnp.concatenate([x_i, x_j - x_i], axis=1)
    q = (feat @ wq + bq).reshape(-1, n_heads, hs)
    k = (feat @ wk + bk).reshape(-1, n_heads, hs)
    v = (feat @ wv + bv).reshape(-1, n_heads, hs)
    v = v * edge_weight[:, None, None]
    scores = q * k / math.sqrt(hs)
    probs = jax.nn.softmax(scores, axis=-1)
    ctx = (probs * v).reshape(-1, Cout)
    agg = jax.ops.segment_sum(ctx, dst, num_segments=N)
    cnt = jax.ops.segment_sum(jnp.ones_like(dst, dtype=jnp.float32), dst, num_segments=N)
    agg = agg / jnp.maximum(cnt, 1.0)[:, None]
    if residual is not None:
        agg = agg + residual
    if apply_relu:
        agg = jnp.maximum(agg, 0.0)
    return agg


# ----------------------------- encoder driver --------------------------------
def sample_edges(key, edge_index, cis):
    """DynamicEdgeConv edge sampling + edge_weight = sign(log|dj-di| - log(cis))."""
    E = edge_index.shape[1]
    # TODO(synk): torch uses python random.sample; here a deterministic PRNG permutation.
    keep = jax.random.permutation(key, E)[: int(E * 0.5)]
    ei = edge_index[:, keep]
    src, dst = ei[0], ei[1]
    d = jnp.abs(dst - src).astype(jnp.float32)
    ew = jnp.sign(jnp.log(d) - jnp.log(jnp.float32(cis)))
    return src, dst, ew


def encoder_forward(x, edge_index, params, n_heads, cis, key, layer_fn):
    k0, k1, k2 = jax.random.split(key, 3)
    s0, d0, w0 = sample_edges(k0, edge_index, cis)
    s1, d1, w1 = sample_edges(k1, edge_index, cis)
    s2, d2, w2 = sample_edges(k2, edge_index, cis)
    x0 = layer_fn(x, s0, d0, w0, params[0], n_heads, residual=None, apply_relu=True)
    x1 = layer_fn(x0, s1, d1, w1, params[1], n_heads, residual=None, apply_relu=True)
    x2 = layer_fn(x1, s2, d2, w2, params[2], n_heads, residual=x0, apply_relu=True)
    return x2


def init_linear(key, fan_in, fan_out):
    kw, kb = jax.random.split(key)
    bound = 1.0 / math.sqrt(fan_in)
    w = jax.random.uniform(kw, (fan_in, fan_out), jnp.float32, -bound, bound)
    b = jax.random.uniform(kb, (fan_out,), jnp.float32, -bound, bound)
    return w, b


def init_edge_conv(key, in_channels, out_channels):
    kq, kk, kv = jax.random.split(key, 3)
    wq, bq = init_linear(kq, 2 * in_channels, out_channels)
    wk, bk = init_linear(kk, 2 * in_channels, out_channels)
    wv, bv = init_linear(kv, 2 * in_channels, out_channels)
    return (wq, bq, wk, bk, wv, bv)


if __name__ == "__main__":
    # Small deterministic setup.
    n_heads = 4
    in_channels = 8
    out_channels = 32      # conv0: 8->32, conv1: 32->16, conv2: 16->32 (+residual)
    cis_span = 2
    N = 16

    root = jax.random.PRNGKey(0)
    k_x, k_p0, k_p1, k_p2, k_edges = jax.random.split(root, 5)

    x = jax.random.normal(k_x, (N, in_channels), jnp.float32)

    # graph: directed edges between nodes within distance 4 (no self loops)
    pairs = [(i, j) for i in range(N) for j in range(N) if i != j and abs(i - j) <= 4]
    edge_index = jnp.asarray(np.array(pairs, dtype=np.int32).T)       # [2, E]

    params = [
        init_edge_conv(k_p0, in_channels, out_channels),
        init_edge_conv(k_p1, out_channels, out_channels // 2),
        init_edge_conv(k_p2, out_channels // 2, out_channels),
    ]

    out_pallas = encoder_forward(x, edge_index, params, n_heads, cis_span,
                                 k_edges, edge_conv_layer_pallas)
    out_pallas = jax.block_until_ready(out_pallas)

    out_ref = encoder_forward(x, edge_index, params, n_heads, cis_span,
                              k_edges, edge_conv_layer_ref)
    out_ref = jax.block_until_ready(out_ref)

    assert out_pallas.shape == (N, out_channels)
    # Tolerance accounts for the EUP approximate reciprocal in the in-kernel
    # softmax (everything else is f32); structure/algebra errors would be O(0.1+).
    np.testing.assert_allclose(np.asarray(out_pallas), np.asarray(out_ref),
                               rtol=1e-2, atol=1e-2)
    print("KERNEL_OK")
</pallas_src>

<mosaic_0001>
module attributes {stable_mosaic.version = 11 : i64} {
  func.func @_edge_conv_kernel(%arg0: i32, %arg1: i32, %arg2: memref<16x128xf32, #tpu.memory_space<vmem>>, %arg3: memref<96x16xf32, #tpu.memory_space<vmem>>, %arg4: memref<96x1xf32, #tpu.memory_space<vmem>>, %arg5: memref<32x32xf32, #tpu.memory_space<vmem>>, %arg6: memref<128x16xbf16, #tpu.memory_space<vmem>>, %arg7: memref<1x16xf32, #tpu.memory_space<vmem>>, %arg8: memref<32x16xf32, #tpu.memory_space<vmem>>, %arg9: memref<32x16xf32, #tpu.memory_space<vmem>>) attributes {dimension_semantics = [#tpu.dimension_semantics<parallel>, #tpu.dimension_semantics<arbitrary>], iteration_bounds = array<i64: 1, 1>, scalar_prefetch = 0 : i64, scratch_operands = 0 : i64, tpu.core_type = #tpu.core_type<tc>, window_params = [{transform_indices = @transform_0, window_bounds = array<i64: 16, 128>}, {pipeline_mode = #tpu.pipeline_mode<synchronous>, transform_indices = @transform_1, window_bounds = array<i64: 96, 16>}, {pipeline_mode = #tpu.pipeline_mode<synchronous>, transform_indices = @transform_2, window_bounds = array<i64: 96, 1>}, {pipeline_mode = #tpu.pipeline_mode<synchronous>, transform_indices = @transform_3, window_bounds = array<i64: 32, 32>}, {transform_indices = @transform_4, window_bounds = array<i64: 128, 16>}, {transform_indices = @transform_5, window_bounds = array<i64: 1, 16>}, {transform_indices = @transform_6, window_bounds = array<i64: 32, 16>}, {transform_indices = @transform_7, window_bounds = array<i64: 32, 16>}]} {
    %c0_i32 = arith.constant 0 : i32
    %0 = arith.cmpi eq, %arg1, %c0_i32 : i32
    %1 = arith.extui %0 : i1 to i32
    %c0_i32_0 = arith.constant 0 : i32
    %2 = arith.cmpi ne, %1, %c0_i32_0 : i32
    scf.if %2 {
      %cst_32 = arith.constant 0.000000e+00 : f32
      %84 = vector.broadcast %cst_32 : f32 to vector<32x16xf32>
      %c0_33 = arith.constant 0 : index
      %c0_34 = arith.constant 0 : index
      %85 = vector.load %arg9[%c0_33, %c0_34] : memref<32x16xf32, #tpu.memory_space<vmem>>, vector<32x16xf32>
      tpu.vector_store %arg9[%c0_33, %c0_34], %84 {strides = array<i32>} : memref<32x16xf32, #tpu.memory_space<vmem>>, vector<32x16xf32>,
    } else {
    }
    %c0 = arith.constant 0 : index
    %c0_1 = arith.constant 0 : index
    %3 = vector.load %arg2[%c0, %c0_1] : memref<16x128xf32, #tpu.memory_space<vmem>>, vector<16x128xf32>
    %c0_2 = arith.constant 0 : index
    %c0_3 = arith.constant 0 : index
    %4 = vector.load %arg3[%c0_2, %c0_3] : memref<96x16xf32, #tpu.memory_space<vmem>>, vector<96x16xf32>
    %cst = arith.constant dense<0.000000e+00> : vector<96x128xf32>
    %5 = tpu.matmul %4, %3, %cst {dimension_numbers = #tpu.dot_dimension_numbers<[1], [0], [0], [1], [0, 0, 1, 1], [], []>} : vector<96x16xf32>, vector<16x128xf32>, vector<96x128xf32> -> vector<96x128xf32>
    %c0_4 = arith.constant 0 : index
    %c0_5 = arith.constant 0 : index
    %6 = vector.load %arg4[%c0_4, %c0_5] : memref<96x1xf32, #tpu.memory_space<vmem>>, vector<96x1xf32>
    %7 = vector.broadcast %6 : vector<96x1xf32> to vector<96x128xf32>
    %8 = arith.addf %5, %7 : vector<96x128xf32>
    %9 = vector.extract_strided_slice %8 {offsets = [0, 0], sizes = [32, 128], strides = [1, 1]} : vector<96x128xf32> to vector<32x128xf32>
    %10 = vector.extract_strided_slice %8 {offsets = [32, 0], sizes = [32, 128], strides = [1, 1]} : vector<96x128xf32> to vector<32x128xf32>
    %11 = vector.extract_strided_slice %8 {offsets = [64, 0], sizes = [32, 128], strides = [1, 1]} : vector<96x128xf32> to vector<32x128xf32>
    %12 = arith.mulf %9, %10 : vector<32x128xf32>
    %cst_6 = arith.constant 0.353553385 : f32
    %13 = vector.broadcast %cst_6 : f32 to vector<32x128xf32>
    %14 = arith.mulf %12, %13 : vector<32x128xf32>
    %c0_7 = arith.constant 0 : index
    %c0_8 = arith.constant 0 : index
    %15 = vector.load %arg5[%c0_7, %c0_8] : memref<32x32xf32, #tpu.memory_space<vmem>>, vector<32x32xf32>
    %cst_9 = arith.constant 0.000000e+00 : f32
    %16 = vector.broadcast %cst_9 : f32 to vector<32x128xf32>
    %17 = vector.extract_strided_slice %15 {offsets = [0, 0], sizes = [32, 1], strides = [1, 1]} : vector<32x32xf32> to vector<32x1xf32>
    %cst_10 = arith.constant 5.000000e-01 : f32
    %18 = vector.broadcast %cst_10 : f32 to vector<32x1xf32>
    %19 = arith.cmpf ogt, %17, %18 : vector<32x1xf32>
    %cst_11 = arith.constant -1.000000e+30 : f32
    %20 = vector.shape_cast %19 : vector<32x1xi1> to vector<32x1xi1>
    %21 = vector.broadcast %20 : vector<32x1xi1> to vector<32x128xi1>
    %22 = vector.broadcast %cst_11 : f32 to vector<32x128xf32>
    %23 = arith.select %21, %14, %22 : vector<32x128xi1>, vector<32x128xf32>
    %cst_12 = arith.constant dense<0xFF800000> : vector<128xf32>
    %24 = vector.multi_reduction <maximumf>, %23, %cst_12 [0] : vector<32x128xf32> to vector<128xf32>
    %25 = vector.shape_cast %24 : vector<128xf32> to vector<1x128xf32>
    %26 = vector.broadcast %17 : vector<32x1xf32> to vector<32x128xf32>
    %27 = vector.broadcast %25 : vector<1x128xf32> to vector<32x128xf32>
    %28 = arith.mulf %26, %27 : vector<32x128xf32>
    %29 = arith.addf %16, %28 : vector<32x128xf32>
    %30 = vector.extract_strided_slice %15 {offsets = [0, 8], sizes = [32, 1], strides = [1, 1]} : vector<32x32xf32> to vector<32x1xf32>
    %cst_13 = arith.constant 5.000000e-01 : f32
    %31 = vector.broadcast %cst_13 : f32 to vector<32x1xf32>
    %32 = arith.cmpf ogt, %30, %31 : vector<32x1xf32>
    %cst_14 = arith.constant -1.000000e+30 : f32
    %33 = vector.shape_cast %32 : vector<32x1xi1> to vector<32x1xi1>
    %34 = vector.broadcast %33 : vector<32x1xi1> to vector<32x128xi1>
    %35 = vector.broadcast %cst_14 : f32 to vector<32x128xf32>
    %36 = arith.select %34, %14, %35 : vector<32x128xi1>, vector<32x128xf32>
    %cst_15 = arith.constant dense<0xFF800000> : vector<128xf32>
    %37 = vector.multi_reduction <maximumf>, %36, %cst_15 [0] : vector<32x128xf32> to vector<128xf32>
    %38 = vector.shape_cast %37 : vector<128xf32> to vector<1x128xf32>
    %39 = vector.broadcast %30 : vector<32x1xf32> to vector<32x128xf32>
    %40 = vector.broadcast %38 : vector<1x128xf32> to vector<32x128xf32>
    %41 = arith.mulf %39, %40 : vector<32x128xf32>
    %42 = arith.addf %29, %41 : vector<32x128xf32>
    %43 = vector.extract_strided_slice %15 {offsets = [0, 16], sizes = [32, 1], strides = [1, 1]} : vector<32x32xf32> to vector<32x1xf32>
    %cst_16 = arith.constant 5.000000e-01 : f32
    %44 = vector.broadcast %cst_16 : f32 to vector<32x1xf32>
    %45 = arith.cmpf ogt, %43, %44 : vector<32x1xf32>
    %cst_17 = arith.constant -1.000000e+30 : f32
    %46 = vector.shape_cast %45 : vector<32x1xi1> to vector<32x1xi1>
    %47 = vector.broadcast %46 : vector<32x1xi1> to vector<32x128xi1>
    %48 = vector.broadcast %cst_17 : f32 to vector<32x128xf32>
    %49 = arith.select %47, %14, %48 : vector<32x128xi1>, vector<32x128xf32>
    %cst_18 = arith.constant dense<0xFF800000> : vector<128xf32>
    %50 = vector.multi_reduction <maximumf>, %49, %cst_18 [0] : vector<32x128xf32> to vector<128xf32>
    %51 = vector.shape_cast %50 : vector<128xf32> to vector<1x128xf32>
    %52 = vector.broadcast %43 : vector<32x1xf32> to vector<32x128xf32>
    %53 = vector.broadcast %51 : vector<1x128xf32> to vector<32x128xf32>
    %54 = arith.mulf %52, %53 : vector<32x128xf32>
    %55 = arith.addf %42, %54 : vector<32x128xf32>
    %56 = vector.extract_strided_slice %15 {offsets = [0, 24], sizes = [32, 1], strides = [1, 1]} : vector<32x32xf32> to vector<32x1xf32>
    %cst_19 = arith.constant 5.000000e-01 : f32
    %57 = vector.broadcast %cst_19 : f32 to vector<32x1xf32>
    %58 = arith.cmpf ogt, %56, %57 : vector<32x1xf32>
    %cst_20 = arith.constant -1.000000e+30 : f32
    %59 = vector.shape_cast %58 : vector<32x1xi1> to vector<32x1xi1>
    %60 = vector.broadcast %59 : vector<32x1xi1> to vector<32x128xi1>
    %61 = vector.broadcast %cst_20 : f32 to vector<32x128xf32>
    %62 = arith.select %60, %14, %61 : vector<32x128xi1>, vector<32x128xf32>
    %cst_21 = arith.constant dense<0xFF800000> : vector<128xf32>
    %63 = vector.multi_reduction <maximumf>, %62, %cst_21 [0] : vector<32x128xf32> to vector<128xf32>
    %64 = vector.shape_cast %63 : vector<128xf32> to vector<1x128xf32>
    %65 = vector.broadcast %56 : vector<32x1xf32> to vector<32x128xf32>
    %66 = vector.broadcast %64 : vector<1x128xf32> to vector<32x128xf32>
    %67 = arith.mulf %65, %66 : vector<32x128xf32>
    %68 = arith.addf %55, %67 : vector<32x128xf32>
    %69 = arith.subf %14, %68 : vector<32x128xf32>
    %70 = math.exp %69 : vector<32x128xf32>
    %cst_22 = arith.constant dense<0.000000e+00> : vector<32x128xf32>
    %71 = tpu.matmul %15, %70, %cst_22 {dimension_numbers = #tpu.dot_dimension_numbers<[1], [0], [0], [1], [0, 0, 1, 1], [], []>} : vector<32x32xf32>, vector<32x128xf32>, vector<32x128xf32> -> vector<32x128xf32>
    %72 = tpu.reciprocal %71 {approx = true} : vector<32x128xf32> -> vector<32x128xf32>
    %73 = arith.mulf %70, %72 : vector<32x128xf32>
    %74 = arith.mulf %73, %11 : vector<32x128xf32>
    %c0_23 = arith.constant 0 : index
    %c0_24 = arith.constant 0 : index
    %75 = vector.load %arg6[%c0_23, %c0_24] : memref<128x16xbf16, #tpu.memory_space<vmem>>, vector<128x16xbf16>
    %76 = arith.extf %75 : vector<128x16xbf16> to vector<128x16xf32>
    %c0_25 = arith.constant 0 : index
    %c0_26 = arith.constant 0 : index
    %77 = vector.load %arg9[%c0_25, %c0_26] : memref<32x16xf32, #tpu.memory_space<vmem>>, vector<32x16xf32>
    %cst_27 = arith.constant dense<0.000000e+00> : vector<32x16xf32>
    %78 = tpu.matmul %74, %76, %cst_27 {dimension_numbers = #tpu.dot_dimension_numbers<[1], [0], [0], [1], [0, 0, 1, 1], [], []>} : vector<32x128xf32>, vector<128x16xf32>, vector<32x16xf32> -> vector<32x16xf32>
    %79 = arith.addf %77, %78 : vector<32x16xf32>
    %c0_28 = arith.constant 0 : index
    %c0_29 = arith.constant 0 : index
    %80 = vector.load %arg9[%c0_28, %c0_29] : memref<32x16xf32, #tpu.memory_space<vmem>>, vector<32x16xf32>
    tpu.vector_store %arg9[%c0_28, %c0_29], %79 {strides = array<i32>} : memref<32x16xf32, #tpu.memory_space<vmem>>, vector<32x16xf32>,
    %c0_i32_30 = arith.constant 0 : i32
    %81 = arith.cmpi eq, %arg1, %c0_i32_30 : i32
    %82 = arith.extui %81 : i1 to i32
    %c0_i32_31 = arith.constant 0 : i32
    %83 = arith.cmpi ne, %82, %c0_i32_31 : i32
    scf.if %83 {
      %c0_32 = arith.constant 0 : index
      %c0_33 = arith.constant 0 : index
      %84 = vector.load %arg9[%c0_32, %c0_33] : memref<32x16xf32, #tpu.memory_space<vmem>>, vector<32x16xf32>
      %c0_34 = arith.constant 0 : index
      %c0_35 = arith.constant 0 : index
      %85 = vector.load %arg7[%c0_34, %c0_35] : memref<1x16xf32, #tpu.memory_space<vmem>>, vector<1x16xf32>
      %86 = vector.broadcast %85 : vector<1x16xf32> to vector<32x16xf32>
      %87 = arith.mulf %84, %86 : vector<32x16xf32>
      %c0_36 = arith.constant 0 : index
      %c0_37 = arith.constant 0 : index
      %88 = vector.load %arg8[%c0_36, %c0_37] : memref<32x16xf32, #tpu.memory_space<vmem>>, vector<32x16xf32>
      %89 = arith.addf %87, %88 : vector<32x16xf32>
      %cst_38 = arith.constant 0.000000e+00 : f32
      %90 = vector.broadcast %cst_38 : f32 to vector<32x16xf32>
      %91 = arith.maximumf %89, %90 : vector<32x16xf32>
      %c0_39 = arith.constant 0 : index
      %c0_40 = arith.constant 0 : index
      %92 = vector.load %arg9[%c0_39, %c0_40] : memref<32x16xf32, #tpu.memory_space<vmem>>, vector<32x16xf32>
      tpu.vector_store %arg9[%c0_39, %c0_40], %91 {strides = array<i32>} : memref<32x16xf32, #tpu.memory_space<vmem>>, vector<32x16xf32>,
    } else {
    }
    return
  }
  func.func @transform_0(%arg0: i32, %arg1: i32) -> (i32, i32) {
    %c0_i32 = arith.constant 0 : i32
    %c0_i32_0 = arith.constant 0 : i32
    return %c0_i32, %arg1 : i32, i32
  }
  func.func @transform_1(%arg0: i32, %arg1: i32) -> (i32, i32) {
    %c0_i32 = arith.constant 0 : i32
    %c0_i32_0 = arith.constant 0 : i32
    %c0_i32_1 = arith.constant 0 : i32
    return %c0_i32, %c0_i32_0 : i32, i32
  }
  func.func @transform_2(%arg0: i32, %arg1: i32) -> (i32, i32) {
    %c0_i32 = arith.constant 0 : i32
    %c0_i32_0 = arith.constant 0 : i32
    %c0_i32_1 = arith.constant 0 : i32
    return %c0_i32, %c0_i32_0 : i32, i32
  }
  func.func @transform_3(%arg0: i32, %arg1: i32) -> (i32, i32) {
    %c0_i32 = arith.constant 0 : i32
    %c0_i32_0 = arith.constant 0 : i32
    %c0_i32_1 = arith.constant 0 : i32
    return %c0_i32, %c0_i32_0 : i32, i32
  }
  func.func @transform_4(%arg0: i32, %arg1: i32) -> (i32, i32) {
    %c0_i32 = arith.constant 0 : i32
    return %arg1, %arg0 : i32, i32
  }
  func.func @transform_5(%arg0: i32, %arg1: i32) -> (i32, i32) {
    %c0_i32 = arith.constant 0 : i32
    %c0_i32_0 = arith.constant 0 : i32
    return %c0_i32, %arg0 : i32, i32
  }
  func.func @transform_6(%arg0: i32, %arg1: i32) -> (i32, i32) {
    %c0_i32 = arith.constant 0 : i32
    %c0_i32_0 = arith.constant 0 : i32
    return %c0_i32, %arg0 : i32, i32
  }
  func.func @transform_7(%arg0: i32, %arg1: i32) -> (i32, i32) {
    %c0_i32 = arith.constant 0 : i32
    %c0_i32_0 = arith.constant 0 : i32
    return %c0_i32, %arg0 : i32, i32
  }
}

</mosaic_0001>

<bundles_post_ra>
// kernel: tpu_custom_call.1
= control target key start
LH: loop header
LB: loop body
LE: loop exit
PB: predicated region body
PF: predicated region fallthrough
CT: control target
= control target key end

     0   :  { %v739_v0 = vmov 0   ;;  %vm30_vm0 = vcmask 130048   ;;  %v740_v25 = vmov 8   ;;  %v741_v26 = vmov 16   ;;  %s1125_s2 = inlined_call_operand.vmem [shape: f32[96,1], index: 2, kind: input, shape index: {}]   ;;  %s1126_s0 = inlined_call_operand.vmem [shape: f32[16,128], index: 0, kind: input, shape index: {}]   ;;  %s1127_s1 = inlined_call_operand.vmem [shape: f32[96,16], index: 1, kind: input, shape index: {}]   ;;  %s1128_s3 = inlined_call_operand.vmem [shape: f32[32,32], index: 3, kind: input, shape index: {}]   ;;  %s1129_s4 = inlined_call_operand.vmem [shape: bf16[128,16], index: 4, kind: input, shape index: {}]   ;;  %s1130_s5 = inlined_call_operand.vmem [shape: f32[1,16], index: 5, kind: input, shape index: {}]   ;;  %s1131_s7 = inlined_call_operand.vmem [shape: f32[32,16], index: 7, kind: output, shape index: {}]   ;;  %s1132_s6 = inlined_call_operand.vmem [shape: f32[32,16], index: 6, kind: input, shape index: {}]  }
   0x1   :  { %697 = vset.pattern.permute.xlu2 %v739_v0  ;;  %696 = vset.pattern.permute.xlu1 %v739_v0  ;;  %v53_v1 = vld [vmem:[%s1125_s2 + $0x20] sm:$0xff]  ;;  %v51_v2 = vld [vmem:[%s1125_s2 + $0x10] sm:$0xff]  ;;  %v36_v4 = vld [vmem:[%s1126_s0 + $0x8] sm:$0xff]  ;;  %v742_v29 = vmov 24  }
   0x2   :  { %v49_v3 = vld [vmem:[%s1125_s2] sm:$0xff]  ;;  %695 = vset.pattern.permute.xlu0 %v739_v0  ;;  %83 = vperm.xlu2 %697, %v53_v1   ;;  %v43_v7 = vld [vmem:[%s1127_s1 + $0x30] sm:$0xff]  ;;  %v54_v8 = vld [vmem:[%s1125_s2 + $0x28] sm:$0xff] }
   0x3   :  { %73 = vperm.xlu1 %696, %v51_v2   ;;  %63 = vperm.xlu0 %695, %v49_v3   ;;  %v35_v5 = vld [vmem:[%s1126_s0] sm:$0xff]  ;;  %v52_v9 = vld [vmem:[%s1125_s2 + $0x18] sm:$0xff]  ;;  %v50_v10 = vld [vmem:[%s1125_s2 + $0x8] sm:$0xff] }
   0x4   :  { %172 = vmatpush.msra.mxu0 %v36_v4  ;;  %672 = vmatpush.msra.mxu3 %v36_v4  ;;  %v37_v6 = vld [vmem:[%s1127_s1] sm:$0xff]  ;;  %v38_v12 = vld [vmem:[%s1127_s1 + $0x8] sm:$0xff]  ;;  %v44_v13 = vld [vmem:[%s1127_s1 + $0x38] sm:$0xff] }
   0x5   :  { %v822_v11 = vld [vmem:[%s1128_s3] sm:$0xff]  ;;  %v56_v15 = vld [vmem:[%s1125_s2 + $0x38] sm:$0xff]  ;;  %v55_v16 = vld [vmem:[%s1125_s2 + $0x30] sm:$0xff] }
   0x6   :  { %173 = vmatpush.msra.mxu0 %v35_v5  ;;  %673 = vmatpush.msra.mxu3 %v35_v5  ;;  %vm223_vm1 = vcmp.gt.f32.partialorder %v822_v11, 0.5  ;;  %v843_v17 = vld [vmem:[%s1128_s3 + $0x18] sm:$0xff]  ;;  %v848_v18 = vld [vmem:[%s1128_s3 + $0x10] sm:$0xff]  ;;  %v853_v19 = vld [vmem:[%s1128_s3 + $0x8] sm:$0xff] }
   0x7   :  { %617 = vmatmul.msk.f32.vlgmr.msra.gmra.mxu0 %vm30_vm0, %v37_v6  ;;  %623 = vmatmul.msk.f32.vlgmr.msra.gmra.mxu3 %vm30_vm0, %v43_v7  ;;  %v227_v14 = vsel %vm223_vm1, 1, %v739_v0  ;;  %v39_v20 = vld [vmem:[%s1127_s1 + $0x10] sm:$0xff]  ;;  %vm226_vm2 = vcmp.gt.f32.partialorder %v843_v17, 0.5  ;;  %vm225_vm3 = vcmp.gt.f32.partialorder %v848_v18, 0.5  ;;  %vm224_vm4 = vcmp.gt.f32.partialorder %v853_v19, 0.5  ;;  %v40_v24 = vld [vmem:[%s1127_s1 + $0x18] sm:$0xff] }
   0x8   :  { %v230_v21 = vsel %vm226_vm2, 1, %v739_v0  ;;  %v229_v22 = vsel %vm225_vm3, 1, %v739_v0  ;;  %v228_v23 = vsel %vm224_vm4, 1, %v739_v0  ;;  %v41_v27 = vld [vmem:[%s1127_s1 + $0x20] sm:$0xff]  ;;  %v42_v28 = vld [vmem:[%s1127_s1 + $0x28] sm:$0xff] }
   0xa   :  { %88 = vperm.xlu2 %697, %v54_v8  }
   0xb   :  { %78 = vperm.xlu1 %696, %v52_v9   ;;  %68 = vperm.xlu0 %695, %v50_v10  }
   0xf   :  { %618 = vmatmul.msk.f32.gmra.mxu0 %vm30_vm0, %v38_v12  ;;  %624 = vmatmul.msk.f32.gmra.mxu3 %vm30_vm0, %v44_v13 }
  0x12   :  { %232 = vperm.xlu2 %697, %v227_v14  }
  0x13   :  { %98 = vperm.xlu1 %696, %v56_v15   ;;  %93 = vperm.xlu0 %695, %v55_v16  }
  0x17   :  { %619 = vmatmul.msk.f32.gmra.mxu0 %vm30_vm0, %v39_v20 }
  0x1a   :  { %241 = vperm.xlu2 %697, %v230_v21  }
  0x1b   :  { %238 = vperm.xlu1 %696, %v229_v22   ;;  %235 = vperm.xlu0 %695, %v228_v23  }
  0x1f   :  { %620 = vmatmul.msk.f32.gmra.mxu0 %vm30_vm0, %v40_v24 }
  0x22   :  { %699 = vset.pattern.permute.xlu2 %v740_v25 }
  0x23   :  { %698 = vset.pattern.permute.xlu1 %v740_v25  ;;  %701 = vset.pattern.permute.xlu0 %v741_v26 }
  0x24   :  { %295 = vperm.xlu2 %699, %v229_v22   ;;  %292 = vperm.xlu1 %698, %v228_v23  }
  0x25   :  { %345 = vperm.xlu0 %701, %v228_v23  }
  0x27   :  { %621 = vmatmul.msk.f32.gmra.mxu0 %vm30_vm0, %v41_v27 }
  0x2c   :  { %700 = vset.pattern.permute.xlu2 %v741_v26  ;;  %298 = vperm.xlu1 %698, %v230_v21  }
  0x2d   :  { %702 = vset.pattern.permute.xlu0 %v740_v25  ;;  %342 = vperm.xlu2 %700, %v227_v14  }
  0x2e   :  { %289 = vperm.xlu0 %702, %v227_v14  }
  0x2f   :  { %622 = vmatmul.msk.f32.gmra.mxu0 %vm30_vm0, %v42_v28 }
  0x34   :  { %703 = vset.pattern.permute.xlu1 %v741_v26 }
  0x35   :  { %351 = vperm.xlu2 %700, %v230_v21   ;;  %348 = vperm.xlu1 %703, %v229_v22  }
  0x36   :  { %326 = vperm.xlu0 %702, %v848_v18  }
  0x3d   :  { %705 = vset.pattern.permute.xlu2 %v742_v29  ;;  %704 = vset.pattern.permute.xlu1 %v742_v29 }
  0x3e   :  { %708 = vset.pattern.permute.xlu0 %v742_v29  ;;  %398 = vperm.xlu2 %705, %v228_v23  }
  0x3f   :  { %395 = vperm.xlu1 %704, %v227_v14   ;;  %401 = vperm.xlu0 %708, %v229_v22  }
  0x46   :  { %706 = vset.pattern.permute.xlu2 %v739_v0 }
  0x47   :  { %404 = vperm.xlu1 %704, %v230_v21   ;;  %277 = vperm.xlu2 %706, %v843_v17  }
  0x48   :  { %436 = vperm.xlu0 %708, %v843_v17  }
  0x4f   :  { %707 = vset.pattern.permute.xlu1 %v740_v25  ;;  %272 = vperm.xlu2 %706, %v848_v18  }
  0x50   :  { %330 = vperm.xlu1 %707, %v843_v17   ;;  %716 = vset.pattern.permute.xlu0 %v741_v26 }
  0x51   :  { %371 = vperm.xlu0 %716, %v822_v11  }
  0x57   :  { %267 = vperm.xlu2 %706, %v853_v19  }
  0x58   :  { %709 = vset.pattern.permute.xlu1 %v741_v26 }
  0x59   :  { %383 = vperm.xlu1 %709, %v843_v17   ;;  %720 = vset.pattern.permute.xlu0 %v739_v0 }
  0x5c   :  { %v84_v30 = vpop.permute.xlu2 %83 }
  0x5f   :  { %711 = vset.pattern.permute.xlu2 %v741_v26 }
  0x60   :  { %379 = vperm.xlu2 %711, %v848_v18  }
  0x61   :  { %710 = vset.pattern.permute.xlu1 %v740_v25 }
  0x62   :  { %322 = vperm.xlu1 %710, %v853_v19  }
  0x64   :  { %v89_v31 = vpop.permute.xlu2 %88 }
  0x68   :  { %713 = vset.pattern.permute.xlu2 %v740_v25 }
  0x69   :  { %318 = vperm.xlu2 %713, %v822_v11  }
  0x6a   :  { %712 = vset.pattern.permute.xlu1 %v739_v0 }
  0x6b   :  { %262 = vperm.xlu1 %712, %v822_v11  }
  0x6c   :  { %v895_v32 = vpop.permute.xlu2 %232 }
  0x6d   :  { %vm243_vm5 = vcmp.eq.s32.totalorder %v895_v32, 1 }
  0x71   :  { %715 = vset.pattern.permute.xlu2 %v742_v29 }
  0x72   :  { %432 = vperm.xlu2 %715, %v848_v18  }
  0x73   :  { %714 = vset.pattern.permute.xlu1 %v741_v26 }
  0x74   :  { %375 = vperm.xlu1 %714, %v853_v19   ;;  %v242_v35 = vpop.permute.xlu2 %241 }
  0x75   :  { %v74_v33 = vpop.permute.xlu1 %73  ;;  %v64_v34 = vpop.permute.xlu0 %63  ;;  %vm246_vm6 = vcmp.eq.s32.totalorder %v242_v35, 1 }
  0x7a   :  { %424 = vperm.xlu2 %715, %v822_v11  }
  0x7c   :  { %717 = vset.pattern.permute.xlu1 %v742_v29 }
  0x7d   :  { %428 = vperm.xlu1 %717, %v853_v19   ;;  %v79_v36 = vpop.permute.xlu1 %78  ;;  %v69_v37 = vpop.permute.xlu0 %68 }
  0x7e   :  { %v296_v38 = vpop.permute.xlu2 %295 }
  0x7f   :  { %vm302_vm7 = vcmp.eq.s32.totalorder %v296_v38, 1 }
  0x82   :  { %719 = vset.pattern.permute.xlu2 %v739_v0 }
  0x84   :  { %v175_v39 = vpop.f32.mrf.mxu0 }
  0x85   :  { %v99_v40 = vpop.permute.xlu1 %98  ;;  %v94_v41 = vpop.permute.xlu0 %93  ;;  %718 = vset.pattern.permute.xlu1 %v739_v0  ;;  %v176_v0 = vadd.f32 %v175_v39, %v64_v34 }
  0x87   :  { %v905_v42 = vpop.permute.xlu2 %342 }
  0x88   :  { %vm353_vm8 = vcmp.eq.s32.totalorder %v905_v42, 1 }
  0x8a   :  { %v193_v51 = vpop.f32.mrf.mxu3 }
  0x8b   :  { %v194_v56 = vadd.f32 %v193_v51, %v94_v41 }
  0x8c   :  { %v178_v43 = vpop.f32.mrf.mxu0 }
  0x8d   :  { %v239_v44 = vpop.permute.xlu1 %238  ;;  %v236_v45 = vpop.permute.xlu0 %235  ;;  %v179_v8 = vadd.f32 %v178_v43, %v69_v37 }
  0x8e   :  { %vm245_vm9 = vcmp.eq.s32.totalorder %v239_v44, 1  ;;  %vm244_vm10 = vcmp.eq.s32.totalorder %v236_v45, 1 }
  0x8f   :  { %v352_v46 = vpop.permute.xlu2 %351 }
  0x90   :  { %vm356_vm11 = vcmp.eq.s32.totalorder %v352_v46, 1 }
  0x92   :  { %v196_v57 = vpop.f32.mrf.mxu3 }
  0x93   :  { %v197_v62 = vadd.f32 %v196_v57, %v99_v40 }
  0x94   :  { %v181_v47 = vpop.f32.mrf.mxu0 }
  0x95   :  { %v182_v58 = vadd.f32 %v181_v47, %v74_v33 }
  0x96   :  { %v293_v48 = vpop.permute.xlu1 %292 }
  0x97   :  { %v346_v49 = vpop.permute.xlu0 %345  ;;  %v213_v1 = vmul.f32 %v194_v56, %v182_v58  ;;  %vm301_vm12 = vcmp.eq.s32.totalorder %v293_v48, 1 }
  0x98   :  { %v907_v50 = vpop.permute.xlu2 %398  ;;  %vm354_vm15 = vcmp.eq.s32.totalorder %v346_v49, 1 }
  0x99   :  { %v916_v6 = vmul.f32 0.35355338, %v213_v1  ;;  %vm407_vm2 = vcmp.eq.s32.totalorder %v907_v50, 1 }
  0x9b   :  { %v249_v14 = vsel %vm245_vm9, %v916_v6, -1e+30  ;;  %v306_v15 = vsel %vm302_vm7, %v916_v6, -1e+30 }
  0x9c   :  { %v184_v52 = vpop.f32.mrf.mxu0 }
  0x9d   :  { %v185_v60 = vadd.f32 %v184_v52, %v79_v36 }
  0x9e   :  { %v299_v53 = vpop.permute.xlu1 %298 }
  0x9f   :  { %v214_v2 = vmul.f32 %v197_v62, %v185_v60  ;;  %vm303_vm1 = vcmp.eq.s32.totalorder %v299_v53, 1 }
  0xa0   :  { %v290_v54 = vpop.permute.xlu0 %289 }
  0xa1   :  { %v909_v55 = vpop.permute.xlu2 %277  ;;  %v919_v9 = vmul.f32 0.35355338, %v214_v2  ;;  %vm300_vm13 = vcmp.eq.s32.totalorder %v290_v54, 1 }
  0xa3   :  { %v250_v16 = vsel %vm246_vm6, %v919_v9, -1e+30  ;;  %v307_v20 = vsel %vm303_vm1, %v919_v9, -1e+30  ;;  %v360_v25 = vsel %vm356_vm11, %v919_v9, -1e+30 }
  0xa4   :  { %v187_v59 = vpop.f32.mrf.mxu0  ;;  %v252_v39 = vmax.f32 %v249_v14, %v250_v16  ;;  %vm459_vm6 = vcmask 261120  }
  0xa5   :  { %v188_v61 = vadd.f32 %v187_v59, %v84_v30 }
  0xa7   :  { %v349_v63 = vpop.permute.xlu1 %348  ;;  %v211_v4 = vmul.f32 %v188_v61, %v176_v0 }
  0xa8   :  { %v913_v5 = vpop.permute.xlu0 %326  ;;  %vm355_vm14 = vcmp.eq.s32.totalorder %v349_v63, 1 }
  0xa9   :  { %v911_v3 = vpop.permute.xlu2 %272  ;;  %v921_v12 = vmul.f32 0.35355338, %v211_v4  ;;  %v359_v24 = vsel %vm355_vm14, %v916_v6, -1e+30 }
  0xaa   :  { %v362_v36 = vmax.f32 %v359_v24, %v360_v25 }
  0xab   :  { %v304_v23 = vsel %vm300_vm13, %v921_v12, -1e+30  ;;  %v247_v33 = vsel %vm243_vm5, %v921_v12, -1e+30  ;;  %v357_v34 = vsel %vm353_vm8, %v921_v12, -1e+30 }
  0xac   :  { %v190_v7 = vpop.f32.mrf.mxu0 }
  0xad   :  { %v191_v10 = vadd.f32 %v190_v7, %v89_v31  ;;  %v309_v31 = vmax.f32 %v306_v15, %v307_v20 }
  0xaf   :  { %v212_v13 = vmul.f32 %v191_v10, %v179_v8 }
  0xb1   :  { %v929_v21 = vmul.f32 0.35355338, %v212_v13  ;;  %v396_v22 = vpop.permute.xlu1 %395  ;;  %v935_v26 = vpop.permute.xlu2 %267 }
  0xb2   :  { %v402_v37 = vpop.permute.xlu0 %401  ;;  %vm406_vm3 = vcmp.eq.s32.totalorder %v396_v22, 1 }
  0xb3   :  { %v248_v27 = vsel %vm244_vm10, %v929_v21, -1e+30  ;;  %v305_v28 = vsel %vm301_vm12, %v929_v21, -1e+30  ;;  %v358_v30 = vsel %vm354_vm15, %v929_v21, -1e+30 }
  0xb4   :  { %v308_v35 = vmax.f32 %v304_v23, %v305_v28  ;;  %v251_v38 = vmax.f32 %v247_v33, %v248_v27  ;;  %v361_v40 = vmax.f32 %v357_v34, %v358_v30  ;;  %vm408_vm4 = vcmp.eq.s32.totalorder %v402_v37, 1 }
  0xb5   :  { %v410_v32 = vsel %vm406_vm3, %v921_v12, -1e+30  ;;  %v411_v46 = vsel %vm407_vm2, %v929_v21, -1e+30  ;;  %v412_v52 = vsel %vm408_vm4, %v916_v6, -1e+30 }
  0xb6   :  { %v310_v41 = vmax.f32 %v308_v35, %v309_v31  ;;  %v253_v43 = vmax.f32 %v251_v38, %v252_v39  ;;  %v363_v44 = vmax.f32 %v361_v40, %v362_v36  ;;  %v414_v56 = vmax.f32 %v410_v32, %v411_v46 }
  0xb8   :  { %v311_v45 = vrot.slane %v310_v41, 4  ;;  %v254_v42 = vrot.slane %v253_v43, 4  ;;  %v364_v48 = vrot.slane %v363_v44, 4 }
  0xb9   :  { %v405_v47 = vpop.permute.xlu1 %404 }
  0xba   :  { %vm409_vm5 = vcmp.eq.s32.totalorder %v405_v47, 1  ;;  %v380_v49 = vpop.permute.xlu2 %379  ;;  %v312_v51 = vmax.f32 %v310_v41, %v311_v45  ;;  %v255_v53 = vmax.f32 %v253_v43, %v254_v42  ;;  %v365_v54 = vmax.f32 %v363_v44, %v364_v48  ;;  %v437_v39 = vpop.permute.xlu0 %436 }
  0xbb   :  { %v413_v50 = vsel %vm409_vm5, %v919_v9, -1e+30 }
  0xbc   :  { %v415_v57 = vmax.f32 %v412_v52, %v413_v50  ;;  %v313_v58 = vrot.slane %v312_v51, 2  ;;  %v256_v59 = vrot.slane %v255_v53, 2  ;;  %v366_v60 = vrot.slane %v365_v54, 2 }
  0xbe   :  { %v416_v61 = vmax.f32 %v414_v56, %v415_v57  ;;  %v314_v62 = vmax.f32 %v312_v51, %v313_v58  ;;  %v257_v63 = vmax.f32 %v255_v53, %v256_v59  ;;  %v367_v0 = vmax.f32 %v365_v54, %v366_v60  ;;  %v45_v58 = vld [vmem:[%s1127_s1 + $0x40] sm:$0xff] }
  0xbf   :  { %625 = vmatmul.msk.f32.gmra.mxu3 %vm30_vm0, %v45_v58 }
  0xc0   :  { %v417_v1 = vrot.slane %v416_v61, 4  ;;  %v315_v2 = vrot.slane %v314_v62, 1  ;;  %v258_v4 = vrot.slane %v257_v63, 1  ;;  %v368_v7 = vrot.slane %v367_v0, 1 }
  0xc2   :  { %v418_v8 = vmax.f32 %v416_v61, %v417_v1  ;;  %v316_v10 = vmax.f32 %v314_v62, %v315_v2  ;;  %v331_v13 = vpop.permute.xlu1 %330  ;;  %v259_v14 = vmax.f32 %v257_v63, %v258_v4  ;;  %v369_v15 = vmax.f32 %v367_v0, %v368_v7  ;;  %v46_v63 = vld [vmem:[%s1127_s1 + $0x48] sm:$0xff] }
  0xc3   :  { %v319_v16 = vpop.permute.xlu2 %318  ;;  %v372_v51 = vpop.permute.xlu0 %371  ;;  %v58_v0 = vld [vmem:[%s1125_s2 + $0x48] sm:$0xff] }
  0xc4   :  { %v419_v20 = vrot.slane %v418_v8, 2  ;;  %v335_v22 = vmul.f32 %v913_v5, %v316_v10  ;;  %v336_v23 = vmul.f32 %v331_v13, %v316_v10  ;;  %v282_v24 = vmul.f32 %v911_v3, %v259_v14  ;;  %108 = vperm.xlu1 %718, %v58_v0  }
  0xc5   :  { %v283_v25 = vmul.f32 %v909_v55, %v259_v14  ;;  %v388_v30 = vmul.f32 %v380_v49, %v369_v15  ;;  %v281_v42 = vmul.f32 %v935_v26, %v259_v14  ;;  %v386_v54 = vmul.f32 %v372_v51, %v369_v15 }
  0xc6   :  { %v420_v27 = vmax.f32 %v418_v8, %v419_v20  ;;  %v339_v28 = vadd.f32 %v335_v22, %v282_v24  ;;  %v47_v8 = vld [vmem:[%s1127_s1 + $0x50] sm:$0xff] }
  0xc7   :  { %v340_v31 = vadd.f32 %v336_v23, %v283_v25  ;;  %626 = vmatmul.msk.f32.gmra.mxu3 %vm30_vm0, %v46_v63  ;;  %v59_v20 = vld [vmem:[%s1125_s2 + $0x50] sm:$0xff] }
  0xc8   :  { %v421_v33 = vrot.slane %v420_v27, 1  ;;  %v392_v34 = vadd.f32 %v388_v30, %v339_v28  ;;  %113 = vperm.xlu2 %719, %v59_v20   ;;  %v670_v23 = vld [vmem:[%s1129_s4 + $0x30] sm:$0xff]   ;;  %v669_v30 = vld [vmem:[%s1129_s4 + $0x28] sm:$0xff]  }
  0xc9   :  { %v660_v28 = vunpack.c.h.bf16 %v670_v23 }
  0xca   :  { %v422_v35 = vmax.f32 %v420_v27, %v421_v33  ;;  %v656_v33 = vunpack.c.h.bf16 %v669_v30 }
  0xcb   :  { %v384_v36 = vpop.permute.xlu1 %383 }
  0xcc   :  { %v389_v37 = vmul.f32 %v384_v36, %v369_v15  ;;  %v433_v38 = vpop.permute.xlu2 %432  ;;  %v442_v41 = vmul.f32 %v437_v39, %v422_v35 }
  0xcd   :  { %v441_v40 = vmul.f32 %v433_v38, %v422_v35 }
  0xce   :  { %v393_v43 = vadd.f32 %v389_v37, %v340_v31  ;;  %v659_v31 = vunpack.c.l.bf16 %v670_v23 }
  0xcf   :  { %v445_v5 = vadd.f32 %v441_v40, %v392_v34  ;;  %627 = vmatmul.msk.f32.gmra.mxu3 %vm30_vm0, %v47_v8  ;;  %v668_v34 = vld [vmem:[%s1129_s4 + $0x20] sm:$0xff]  }
  0xd0   :  { %v446_v44 = vadd.f32 %v442_v41, %v393_v43  ;;  %v652_v36 = vunpack.c.h.bf16 %v668_v34  ;;  %v665_v41 = vld [vmem:[%s1129_s4 + $0x8] sm:$0xff]  }
  0xd1   :  { %v449_v3 = vsub.f32 %v916_v6, %v445_v5  ;;  %v333_v6 = vmul.f32 %v319_v16, %v316_v10  ;;  %v60_v16 = vld [vmem:[%s1125_s2 + $0x58] sm:$0xff]  ;;  %v640_v43 = vunpack.c.h.bf16 %v665_v41 }
  0xd2   :  { %v450_v55 = vsub.f32 %v919_v9, %v446_v44  ;;  %118 = vperm.xlu0 %720, %v60_v16  }
  0xd3   :  { %v455_v45 = vmul.f32 1.442695, %v449_v3 }
  0xd4   :  { %v323_v32 = vpop.permute.xlu1 %322  ;;  %v457_v46 = vmul.f32 1.442695, %v450_v55  ;;  %v425_v9 = vpop.permute.xlu2 %424 }
  0xd5   :  { %v334_v47 = vmul.f32 %v323_v32, %v316_v10  ;;  %v439_v26 = vmul.f32 %v425_v9, %v422_v35  ;;  %v57_v10 = vld [vmem:[%s1125_s2 + $0x40] sm:$0xff] }
  0xd6   :  { %723 = vpow2.f32 %v457_v46  ;;  %103 = vperm.xlu1 %718, %v57_v10   ;;  %v743_v46 = vmov 0.0  }
  0xd7   :  { %v338_v48 = vadd.f32 %v334_v47, %v281_v42  ;;  %725 = vpow2.f32 %v455_v45  ;;  %31 = vst.msk [vmem:[%s1131_s7] sm:$0xff] %vm30_vm0, %v743_v46 }
  0xd8   :  { %32 = vst.msk [vmem:[%s1131_s7 + $0x8] sm:$0xff] %vm30_vm0, %v743_v46 }
  0xd9   :  { %33 = vst.msk [vmem:[%s1131_s7 + $0x10] sm:$0xff] %vm30_vm0, %v743_v46 }
  0xda   :  { %721 = vset.pattern.permute.xlu0 %v742_v29  ;;  %v651_v29 = vunpack.c.l.bf16 %v668_v34  ;;  %34 = vst.msk [vmem:[%s1131_s7 + $0x18] sm:$0xff] %vm30_vm0, %v743_v46 }
  0xdc   :  { %v959_v49 = vpop.eup %723 }
  0xdd   :  { %v263_v52 = vpop.permute.xlu1 %262  ;;  %480 = vmatpush.msra.mxu1 %v959_v49  ;;  %v962_v53 = vpop.eup %725 }
  0xde   :  { %v280_v50 = vmul.f32 %v263_v52, %v259_v14  ;;  %v541_v10 = vld [vmem:[%s1131_s7] sm:$0xff] }
  0xdf   :  { %481 = vmatpush.msra.mxu1 %v962_v53  ;;  %v542_v16 = vld [vmem:[%s1131_s7 + $0x8] sm:$0xff] }
  0xe0   :  { %v337_v56 = vadd.f32 %v333_v6, %v280_v50 }
  0xe1   :  { %v544_v34 = vld [vmem:[%s1131_s7 + $0x18] sm:$0xff] }
  0xe2   :  { %v390_v57 = vadd.f32 %v386_v54, %v337_v56 }
  0xe4   :  { %v443_v59 = vadd.f32 %v439_v26, %v390_v57 }
  0xe6   :  { %v376_v60 = vpop.permute.xlu1 %375  ;;  %v447_v7 = vsub.f32 %v921_v12, %v443_v59  ;;  %v48_v12 = vld [vmem:[%s1127_s1 + $0x58] sm:$0xff] }
  0xe7   :  { %v387_v61 = vmul.f32 %v376_v60, %v369_v15  ;;  %628 = vmatmul.msk.f32.gmra.mxu3 %vm30_vm0, %v48_v12 }
  0xe8   :  { %v451_v15 = vmul.f32 1.442695, %v447_v7 }
  0xe9   :  { %v391_v62 = vadd.f32 %v387_v61, %v338_v48 }
  0xef   :  { %v429_v1 = vpop.permute.xlu1 %428 }
  0xf0   :  { %v440_v2 = vmul.f32 %v429_v1, %v422_v35  ;;  %v655_v35 = vunpack.c.l.bf16 %v669_v30  ;;  %v598_v30 = vld [vmem:[%s1132_s6 + $0x8] sm:$0xff] }
  0xf2   :  { %v444_v4 = vadd.f32 %v440_v2, %v391_v62 }
  0xf4   :  { %v448_v13 = vsub.f32 %v929_v21, %v444_v4  ;;  %v671_v21 = vld [vmem:[%s1129_s4 + $0x38] sm:$0xff]  }
  0xf5   :  { %v664_v22 = vunpack.c.h.bf16 %v671_v21  ;;  %v663_v25 = vunpack.c.l.bf16 %v671_v21 }
  0xf6   :  { %v453_v14 = vmul.f32 1.442695, %v448_v13 }
  0xf7   :  { %674 = vmatpush.msra.mxu2 %v664_v22 }
  0xf8   :  { %727 = vpow2.f32 %v453_v14 }
  0xf9   :  { %729 = vpow2.f32 %v451_v15  ;;  %675 = vmatpush.msra.mxu2 %v663_v25  ;;  %v597_v15 = vld [vmem:[%s1132_s6] sm:$0xff] }
  0xfb   :  { %676 = vmatpush.msra.mxu2 %v660_v28 }
  0xfd   :  { %677 = vmatpush.msra.mxu2 %v659_v31 }
  0xfe   :  { %v1001_v24 = vpop.eup %727 }
  0xff   :  { %482 = vmatpush.msra.mxu1 %v1001_v24  ;;  %v1004_v27 = vpop.eup %729  ;;  %678 = vmatpush.msra.mxu2 %v656_v33 }
 0x101   :  { %483 = vmatpush.msra.mxu1 %v1004_v27  ;;  %679 = vmatpush.msra.mxu2 %v655_v35 }
 0x102   :  { %629 = vmatmul.msk.f32.vlgmr.msra.gmra.mxu1 %vm459_vm6, %v822_v11  ;;  %v667_v11 = vld [vmem:[%s1129_s4 + $0x18] sm:$0xff]  }
 0x103   :  { %545 = vmatpush.msrb.mxu1 %v664_v22  ;;  %680 = vmatpush.msra.mxu2 %v652_v36  ;;  %v648_v37 = vunpack.c.h.bf16 %v667_v11  ;;  %v647_v38 = vunpack.c.l.bf16 %v667_v11 }
 0x105   :  { %546 = vmatpush.msrb.mxu1 %v663_v25  ;;  %681 = vmatpush.msra.mxu2 %v651_v29 }
 0x107   :  { %547 = vmatpush.msrb.mxu1 %v660_v28  ;;  %682 = vmatpush.msra.mxu2 %v648_v37 }
 0x109   :  { %548 = vmatpush.msrb.mxu1 %v659_v31  ;;  %683 = vmatpush.msra.mxu2 %v647_v38 }
 0x10a   :  { %630 = vmatmul.msk.f32.gmra.mxu1 %vm459_vm6, %v853_v19  ;;  %v666_v19 = vld [vmem:[%s1129_s4 + $0x10] sm:$0xff]  }
 0x10b   :  { %549 = vmatpush.msrb.mxu1 %v656_v33  ;;  %v644_v39 = vunpack.c.h.bf16 %v666_v19  ;;  %v643_v40 = vunpack.c.l.bf16 %v666_v19 }
 0x10d   :  { %550 = vmatpush.msrb.mxu1 %v655_v35  ;;  %684 = vmatpush.msra.mxu2 %v644_v39 }
 0x10f   :  { %551 = vmatpush.msrb.mxu1 %v652_v36  ;;  %685 = vmatpush.msra.mxu2 %v643_v40 }
 0x111   :  { %552 = vmatpush.msrb.mxu1 %v651_v29  ;;  %686 = vmatpush.msra.mxu2 %v640_v43 }
 0x112   :  { %631 = vmatmul.msk.f32.gmra.mxu1 %vm459_vm6, %v848_v18  ;;  %v634_v18 = vld [vmem:[%s1129_s4] sm:$0xff]  }
 0x113   :  { %553 = vmatpush.msrb.mxu1 %v648_v37  ;;  %v636_v5 = vunpack.c.h.bf16 %v634_v18  ;;  %v635_v44 = vunpack.c.l.bf16 %v634_v18  ;;  %v599_v37 = vld [vmem:[%s1132_s6 + $0x10] sm:$0xff] }
 0x115   :  { %554 = vmatpush.msrb.mxu1 %v647_v38 }
 0x117   :  { %555 = vmatpush.msrb.mxu1 %v644_v39 }
 0x119   :  { %556 = vmatpush.msrb.mxu1 %v643_v40 }
 0x11a   :  { %632 = vmatmul.msk.f32.gmra.mxu1 %vm459_vm6, %v843_v17  ;;  %v639_v17 = vunpack.c.l.bf16 %v665_v41  ;;  %v600_v41 = vld [vmem:[%s1132_s6 + $0x18] sm:$0xff] }
 0x11b   :  { %557 = vmatpush.msrb.mxu1 %v640_v43 }
 0x11c   :  { %687 = vmatpush.msra.mxu2 %v639_v17 }
 0x11d   :  { %558 = vmatpush.msrb.mxu1 %v639_v17 }
 0x11e   :  { %688 = vmatpush.msra.mxu2 %v636_v5 }
 0x11f   :  { %559 = vmatpush.msrb.mxu1 %v636_v5 }
 0x120   :  { %689 = vmatpush.msra.mxu2 %v635_v44 }
 0x121   :  { %560 = vmatpush.msrb.mxu1 %v635_v44 }
 0x122   :  { %v114_v58 = vpop.permute.xlu2 %113 }
 0x136   :  { %v109_v3 = vpop.permute.xlu1 %108 }
 0x142   :  { %v199_v55 = vpop.f32.mrf.mxu3 }
 0x144   :  { %v119_v0 = vpop.permute.xlu0 %118 }
 0x148   :  { %v104_v32 = vpop.permute.xlu1 %103 }
 0x149   :  { %v200_v42 = vadd.f32 %v199_v55, %v104_v32 }
 0x14a   :  { %v202_v48 = vpop.f32.mrf.mxu3 }
 0x14b   :  { %v203_v50 = vadd.f32 %v202_v48, %v109_v3 }
 0x152   :  { %v205_v26 = vpop.f32.mrf.mxu3 }
 0x153   :  { %v206_v59 = vadd.f32 %v205_v26, %v114_v58 }
 0x16a   :  { %v208_v1 = vpop.f32.mrf.mxu3 }
 0x16b   :  { %v209_v2 = vadd.f32 %v208_v1, %v119_v0 }
 0x17f   :  { %v485_v45 = vpop.f32.mrf.mxu1 }
 0x180   :  { %731 = vrcp.f32 %v485_v45 }
 0x186   :  { %v732_v47 = vpop.eup %731 }
 0x187   :  { %v501_v51 = vmul.f32 %v732_v47, %v1004_v27  ;;  %v488_v52 = vpop.f32.mrf.mxu1 }
 0x188   :  { %733 = vrcp.f32 %v488_v52 }
 0x189   :  { %v505_v6 = vmul.f32 %v501_v51, %v200_v42 }
 0x18b   :  { %561 = vmatmul.f32.vlgmr.msrb.gmra.mxu1 %v505_v6 }
 0x18e   :  { %v734_v9 = vpop.eup %733 }
 0x18f   :  { %v491_v54 = vpop.f32.mrf.mxu1  ;;  %v502_v56 = vmul.f32 %v734_v9, %v1001_v24  ;;  %v543_v24 = vld [vmem:[%s1131_s7 + $0x10] sm:$0xff] }
 0x190   :  { %735 = vrcp.f32 %v491_v54 }
 0x191   :  { %v506_v57 = vmul.f32 %v502_v56, %v203_v50 }
 0x193   :  { %564 = vmatmul.f32.vlgmr.msra.gmra.mxu2 %v506_v57 }
 0x196   :  { %v736_v60 = vpop.eup %735 }
 0x197   :  { %v494_v61 = vpop.f32.mrf.mxu1  ;;  %v503_v62 = vmul.f32 %v736_v60, %v962_v53  ;;  %v722_v53 = vld [vmem:[%s1130_s5] ss:$0 sm:$0xff] }
 0x198   :  { %737 = vrcp.f32 %v494_v61 }
 0x199   :  { %v507_v63 = vmul.f32 %v503_v62, %v206_v59 }
 0x19b   :  { %567 = vmatmul.f32.gmra.mxu2 %v507_v63 }
 0x19e   :  { %v738_v4 = vpop.eup %737 }
 0x19f   :  { %v504_v7 = vmul.f32 %v738_v4, %v959_v49 }
 0x1a1   :  { %v508_v8 = vmul.f32 %v504_v7, %v209_v2 }
 0x1a3   :  { %570 = vmatmul.f32.gmra.mxu2 %v508_v8 }
 0x208   :  { %v562_v13 = vpop.f32.mrf.mxu1 }
 0x209   :  { %v574_v14 = vadd.f32 %v562_v13, %v541_v10 }
 0x20b   :  { %578 = vst.msk [vmem:[%s1131_s7] sm:$0xff] %vm30_vm0, %v574_v14 }
 0x212   :  { %v585_v49 = vld [vmem:[%s1131_s7] sm:$0xff] }
 0x213   :  { %v593_v12 = vmul.f32 %v722_v53, %v585_v49 }
 0x215   :  { %v601_v20 = vadd.f32 %v597_v15, %v593_v12 }
 0x216   :  { %v565_v21 = vpop.f32.mrf.mxu2 }
 0x217   :  { %v605_v22 = vmax.f32 %v601_v20, 0.0  ;;  %v575_v23 = vadd.f32 %v565_v21, %v542_v16 }
 0x219   :  { %609 = vst.msk [vmem:[%s1131_s7] sm:$0xff] %vm30_vm0, %v605_v22 }
 0x21a   :  { %579 = vst.msk [vmem:[%s1131_s7 + $0x8] sm:$0xff] %vm30_vm0, %v575_v23 }
 0x21e   :  { %v568_v25 = vpop.f32.mrf.mxu2 }
 0x21f   :  { %v576_v27 = vadd.f32 %v568_v25, %v543_v24 }
 0x221   :  { %v586_v28 = vld [vmem:[%s1131_s7 + $0x8] sm:$0xff]  ;;  %580 = vst.msk [vmem:[%s1131_s7 + $0x10] sm:$0xff] %vm30_vm0, %v576_v27 }
 0x222   :  { %v594_v31 = vmul.f32 %v722_v53, %v586_v28 }
 0x224   :  { %v602_v33 = vadd.f32 %v598_v30, %v594_v31 }
 0x226   :  { %v606_v35 = vmax.f32 %v602_v33, 0.0  ;;  %v571_v36 = vpop.f32.mrf.mxu2 }
 0x227   :  { %v577_v11 = vadd.f32 %v571_v36, %v544_v34 }
 0x228   :  { %610 = vst.msk [vmem:[%s1131_s7 + $0x8] sm:$0xff] %vm30_vm0, %v606_v35  ;;  %v587_v29 = vld [vmem:[%s1131_s7 + $0x10] sm:$0xff] }
 0x229   :  { %v595_v38 = vmul.f32 %v722_v53, %v587_v29  ;;  %581 = vst.msk [vmem:[%s1131_s7 + $0x18] sm:$0xff] %vm30_vm0, %v577_v11 }
 0x22b   :  { %v603_v19 = vadd.f32 %v599_v37, %v595_v38 }
 0x22d   :  { %v607_v39 = vmax.f32 %v603_v19, 0.0 }
 0x22f   :  { %611 = vst.msk [vmem:[%s1131_s7 + $0x10] sm:$0xff] %vm30_vm0, %v607_v39 }
 0x230   :  { %v588_v40 = vld [vmem:[%s1131_s7 + $0x18] sm:$0xff] }
 0x231   :  { %v596_v43 = vmul.f32 %v722_v53, %v588_v40 }
 0x233   :  { %v604_v17 = vadd.f32 %v600_v41, %v596_v43 }
 0x235   :  { %v608_v18 = vmax.f32 %v604_v17, 0.0 }
 0x237   :  { %612 = vst.msk [vmem:[%s1131_s7 + $0x18] sm:$0xff] %vm30_vm0, %v608_v18 }

</bundles_post_ra>
